<compile_context>
chip_gen: v5e
topology: v5e:2x2
jax: 0.10.0
libtpu: 0.0.40
codegen_flags: <defaults>
</compile_context>

<pallas_src>
import jax
import jax.numpy as jnp
from jax.experimental import pallas as pl
from jax.experimental.pallas import tpu as pltpu


# --------------------------------------------------------------------------- #
# helpers
# --------------------------------------------------------------------------- #
def _round_up(x, n):
    return ((x + n - 1) // n) * n


def _sublanes(dtype):
    # Rows per (sublane,lane) tile for this dtype (sub-32-bit packs sublanes).
    return 8 * (4 // jnp.dtype(dtype).itemsize)


def _vmem_capacity_bytes():
    try:
        return int(pltpu.get_tpu_info().vmem_capacity_bytes)
    except Exception:
        return 128 * 1024 * 1024   # v5e/v6e default if the query is unavailable


# --------------------------------------------------------------------------- #
# kernels
# --------------------------------------------------------------------------- #
def _spectral_vpu_kernel(xr_ref, xi_ref, wr_ref, wi_ref, or_ref, oi_ref):
    """Modes-on-lanes complex multiply-accumulate (small-channel VPU path).

    xr/xi: (B, Cin, MT)   wr/wi: (Cin, Cout, MT)   or/oi: (B, Cout, MT)
    out[b, o, m] = sum_i x[b, i, m] * w[i, o, m]  (complex), f32 accumulation.
    """
    cin = xr_ref.shape[1]
    xr = xr_ref[...].astype(jnp.float32)   # f32 VPU math (v5e has no bf16 VALU)
    xi = xi_ref[...].astype(jnp.float32)
    acc_r = jnp.zeros(or_ref.shape, jnp.float32)
    acc_i = jnp.zeros(oi_ref.shape, jnp.float32)
    for i in range(cin):                               # static, Cin < 64 here
        xri = xr[:, i:i + 1, :]                        # (B, 1, MT)
        xii = xi[:, i:i + 1, :]
        wri = wr_ref[i][None].astype(jnp.float32)      # (1, Cout, MT)
        wii = wi_ref[i][None].astype(jnp.float32)
        acc_r = acc_r + xri * wri - xii * wii
        acc_i = acc_i + xri * wii + xii * wri
    or_ref[...] = acc_r.astype(or_ref.dtype)
    oi_ref[...] = acc_i.astype(oi_ref.dtype)


def _spectral_mxu_kernel(xr_ref, xi_ref, wr_ref, wi_ref, o_ref):
    """Per-mode batched complex matmul (large-channel MXU path).

    xr/xi: (MT, B, Cin)  wr/wi: (MT, Cin, Cout)  o: (MT, B, 2*Cout)=[real|imag]
    Weights are stored once; the 4 small dots + VPU add/sub replace the old
    duplicated [[wr,wi],[-wi,wr]] block matmul (half the weight HBM bytes).
    """
    xr = xr_ref[...]
    xi = xi_ref[...]
    wr = wr_ref[...]
    wi = wi_ref[...]
    rr = jnp.einsum('mbi,mio->mbo', xr, wr, preferred_element_type=jnp.float32)
    ii = jnp.einsum('mbi,mio->mbo', xi, wi, preferred_element_type=jnp.float32)
    ri = jnp.einsum('mbi,mio->mbo', xr, wi, preferred_element_type=jnp.float32)
    ir = jnp.einsum('mbi,mio->mbo', xi, wr, preferred_element_type=jnp.float32)
    o_ref[...] = jnp.concatenate([rr - ii, ri + ir], axis=-1).astype(o_ref.dtype)


# --------------------------------------------------------------------------- #
# module
# --------------------------------------------------------------------------- #
class SpectralConv2dFast:
    """JAX/Pallas port of SpectralConv2d_fast (FNO 2D Fourier layer)."""

    def __init__(self, in_channels, out_channels, modes1, modes2, key,
                 compute_dtype=jnp.bfloat16, batch_hint=8,
                 mode_tile_override=None):
        self.in_channels = in_channels
        self.out_channels = out_channels
        self.modes1 = modes1
        self.modes2 = modes2
        self.compute_dtype = compute_dtype

        scale = 1.0 / (in_channels * out_channels)
        shape = (in_channels, out_channels, modes1, modes2)
        k1, k2, k3, k4 = jax.random.split(key, 4)
        # torch.rand(..., dtype=cfloat): uniform [0,1) real & imag parts.
        self.weights1 = (scale * (jax.random.uniform(k1, shape, jnp.float32)
                                  + 1j * jax.random.uniform(k2, shape, jnp.float32))
                         ).astype(jnp.complex64)
        self.weights2 = (scale * (jax.random.uniform(k3, shape, jnp.float32)
                                  + 1j * jax.random.uniform(k4, shape, jnp.float32))
                         ).astype(jnp.complex64)

        # ---- generation-aware VMEM policy --------------------------------
        vmem_cap = _vmem_capacity_bytes()
        small_vmem = vmem_cap <= 64 * 1024 * 1024          # v7x-like part
        self._vmem_limit = (32 if small_vmem else 64) * 1024 * 1024
        self._prefer_multi_tile = small_vmem               # 2 TCs share the grid
        step_budget = 8 * 1024 * 1024                      # per-grid-step bytes

        m_total = 2 * modes1 * modes2
        self.m_total = m_total
        isz = jnp.dtype(compute_dtype).itemsize
        sub = _sublanes(compute_dtype)
        b_hint = max(1, batch_hint)

        # MXU path only when the matmul dims actually fill MXU columns/lanes.
        self.use_mxu = (in_channels >= 64 and out_channels >= 64)

        if self.use_mxu:
            # Padded (8/16,128) per-mode footprint, x2 for double buffering.
            per_mode = 2 * (
                2 * _round_up(b_hint, sub) * _round_up(in_channels, 128) * isz
                + 2 * _round_up(in_channels, sub) * _round_up(out_channels, 128) * isz
                + _round_up(b_hint, sub) * _round_up(2 * out_channels, 128) * isz)
            cap = max(1, step_budget // max(per_mode, 1))
            if self._prefer_multi_tile and m_total >= 2:
                cap = min(cap, m_total // 2)               # >= 2 tiles on v7x
            cap = max(1, min(cap, m_total))
            mt = 1
            for d in range(cap, 0, -1):                    # exact divisor of M
                if m_total % d == 0:
                    mt = d
                    break
            self._mode_tile = mt
            self._num_tiles = m_total // mt
            self._m_pad = m_total                          # never padded
        else:
            # Padded footprint per 128-lane block of M, x2 for double buffering.
            per_lane_block = 2 * (
                2 * b_hint * _round_up(in_channels, sub) * 128 * isz
                + 2 * in_channels * _round_up(out_channels, sub) * 128 * isz
                + 2 * b_hint * _round_up(out_channels, sub) * 128 * isz)
            lane_blocks = max(1, step_budget // max(per_lane_block, 1))
            mt = lane_blocks * 128
            if self._prefer_multi_tile and m_total > 256:
                mt = min(mt, _round_up(pl.cdiv(m_total, 2), 128))
            if mode_tile_override is not None:
                mt = mode_tile_override
            if mt >= m_total and mode_tile_override is None:
                # Single full-extent tile: no 128 constraint, no padding.
                self._mode_tile = m_total
                self._num_tiles = 1
                self._m_pad = m_total
            else:
                mt = max(128, (mt // 128) * 128)           # lane-aligned tiles
                self._mode_tile = mt
                self._num_tiles = pl.cdiv(m_total, mt)
                self._m_pad = self._num_tiles * mt

        # ---- weight re-layout, hoisted out of forward (constant per layer) --
        w = jnp.concatenate([self.weights1, self.weights2], axis=2)  # (Ci,Co,2m1,m2)
        if self.use_mxu:
            w = jnp.transpose(w, (2, 3, 0, 1)).reshape(
                m_total, in_channels, out_channels)                  # (M,Ci,Co)
            self.wr = jnp.real(w).astype(compute_dtype)
            self.wi = jnp.imag(w).astype(compute_dtype)
        else:
            w = w.reshape(in_channels, out_channels, m_total)        # (Ci,Co,M)
            wr = jnp.real(w)
            wi = jnp.imag(w)
            if self._m_pad != m_total:                               # pad ONCE
                pad = ((0, 0), (0, 0), (0, self._m_pad - m_total))
                wr = jnp.pad(wr, pad)
                wi = jnp.pad(wi, pad)
            self.wr = wr.astype(compute_dtype)
            self.wi = wi.astype(compute_dtype)

    # ----------------------------------------------------------------- #
    def _forward_vpu(self, xm):
        B = xm.shape[0]
        cin, cout = self.in_channels, self.out_channels
        m1, m2 = self.modes1, self.modes2
        M, m_pad = self.m_total, self._m_pad
        mt, num_tiles = self._mode_tile, self._num_tiles
        cd = self.compute_dtype

        # Natural (B, Cin, M) layout: no transpose; real/imag as two inputs.
        xm = xm.reshape(B, cin, M)
        xr = jnp.real(xm).astype(cd)
        xi = jnp.imag(xm).astype(cd)
        if m_pad != M:
            # Only the (small) activation operand is padded, fused with the
            # real/imag/astype relayout; weights were padded once at init.
            pad = ((0, 0), (0, 0), (0, m_pad - M))
            xr = jnp.pad(xr, pad)
            xi = jnp.pad(xi, pad)

        isz = jnp.dtype(cd).itemsize
        cost = pl.CostEstimate(
            flops=int(8 * M * B * cin * cout),
            transcendentals=0,
            bytes_accessed=int((2 * B * cin + 2 * cin * cout + 2 * B * cout)
                               * m_pad * isz))

        out_r, out_i = pl.pallas_call(
            _spectral_vpu_kernel,
            out_shape=(jax.ShapeDtypeStruct((B, cout, m_pad), cd),
                       jax.ShapeDtypeStruct((B, cout, m_pad), cd)),
            grid=(num_tiles,),
            in_specs=[
                pl.BlockSpec((B, cin, mt), lambda i: (0, 0, i)),
                pl.BlockSpec((B, cin, mt), lambda i: (0, 0, i)),
                pl.BlockSpec((cin, cout, mt), lambda i: (0, 0, i)),
                pl.BlockSpec((cin, cout, mt), lambda i: (0, 0, i)),
            ],
            out_specs=(pl.BlockSpec((B, cout, mt), lambda i: (0, 0, i)),
                       pl.BlockSpec((B, cout, mt), lambda i: (0, 0, i))),
            compiler_params=pltpu.CompilerParams(
                dimension_semantics=("parallel",),
                vmem_limit_bytes=self._vmem_limit),
            cost_estimate=cost,
        )(xr, xi, self.wr, self.wi)

        out_c = jax.lax.complex(out_r[..., :M].astype(jnp.float32),
                                out_i[..., :M].astype(jnp.float32))
        return out_c.reshape(B, cout, 2 * m1, m2)

    # ----------------------------------------------------------------- #
    def _forward_mxu(self, xm):
        B = xm.shape[0]
        cin, cout = self.in_channels, self.out_channels
        m1, m2 = self.modes1, self.modes2
        M = self.m_total
        mt, num_tiles = self._mode_tile, self._num_tiles
        cd = self.compute_dtype

        xm = jnp.transpose(xm, (2, 3, 0, 1)).reshape(M, B, cin)
        xr = jnp.real(xm).astype(cd)
        xi = jnp.imag(xm).astype(cd)

        isz = jnp.dtype(cd).itemsize
        cost = pl.CostEstimate(
            flops=int(8 * M * B * cin * cout),
            transcendentals=0,
            bytes_accessed=int((2 * B * cin + 2 * cin * cout + 2 * B * cout)
                               * M * isz))

        out = pl.pallas_call(
            _spectral_mxu_kernel,
            out_shape=jax.ShapeDtypeStruct((M, B, 2 * cout), cd),
            grid=(num_tiles,),
            in_specs=[
                pl.BlockSpec((mt, B, cin), lambda i: (i, 0, 0)),
                pl.BlockSpec((mt, B, cin), lambda i: (i, 0, 0)),
                pl.BlockSpec((mt, cin, cout), lambda i: (i, 0, 0)),
                pl.BlockSpec((mt, cin, cout), lambda i: (i, 0, 0)),
            ],
            out_specs=pl.BlockSpec((mt, B, 2 * cout), lambda i: (i, 0, 0)),
            compiler_params=pltpu.CompilerParams(
                dimension_semantics=("parallel",),
                vmem_limit_bytes=self._vmem_limit),
            cost_estimate=cost,
        )(xr, xi, self.wr, self.wi)

        out_c = jax.lax.complex(out[..., :cout].astype(jnp.float32),
                                out[..., cout:].astype(jnp.float32))
        out_c = out_c.reshape(2 * m1, m2, B, cout)
        return jnp.transpose(out_c, (2, 3, 0, 1))

    # ----------------------------------------------------------------- #
    def __call__(self, x):
        # x: (B, Cin, H, W) float32 (NCHW, same as the PyTorch module)
        B, _, H, W = x.shape
        m1, m2 = self.modes1, self.modes2
        cout = self.out_channels

        # TODO(synk): rfft2 / irfft2 have no Pallas TPU primitive -> plain XLA.
        x_ft = jnp.fft.rfft2(x)                              # (B,Cin,H,W//2+1)

        # Gather low + high frequency rows once; both weight paths share one
        # fused mode axis M = 2*m1*m2 (single pallas_call).
        xm = jnp.concatenate([x_ft[:, :, :m1, :m2],
                              x_ft[:, :, H - m1:, :m2]], axis=2)  # (B,Cin,2m1,m2)

        out_c = self._forward_mxu(xm) if self.use_mxu else self._forward_vpu(xm)

        # Same scatter order as PyTorch (low then high) so the overlap
        # behaviour for H < 2*modes1 is preserved.
        out_ft = jnp.zeros((B, cout, H, W // 2 + 1), dtype=jnp.complex64)
        out_ft = out_ft.at[:, :, :m1, :m2].set(out_c[:, :, :m1])
        out_ft = out_ft.at[:, :, H - m1:, :m2].set(out_c[:, :, m1:])
        return jnp.fft.irfft2(out_ft, s=(H, W))              # (B, Cout, H, W)


# --------------------------------------------------------------------------- #
# pure-JAX reference (mirrors the PyTorch forward) for validation
# --------------------------------------------------------------------------- #
def _reference_forward(module, x):
    B, _, H, W = x.shape
    m1, m2 = module.modes1, module.modes2
    x_ft = jnp.fft.rfft2(x)
    out_ft = jnp.zeros((B, module.out_channels, H, W // 2 + 1), dtype=jnp.complex64)
    out_ft = out_ft.at[:, :, :m1, :m2].set(
        jnp.einsum('bixy,ioxy->boxy', x_ft[:, :, :m1, :m2], module.weights1))
    out_ft = out_ft.at[:, :, H - m1:, :m2].set(
        jnp.einsum('bixy,ioxy->boxy', x_ft[:, :, H - m1:, :m2], module.weights2))
    return jnp.fft.irfft2(out_ft, s=(H, W))


if __name__ == "__main__":
    key = jax.random.PRNGKey(0)
    k_w, k_w2, k_w3, k_x, k_x2 = jax.random.split(key, 5)

    # 1) Small-channel VPU (modes-on-lanes) path, f32: tight validation.
    B, Cin, Cout, H, W = 2, 4, 4, 16, 16
    x = jax.random.normal(k_x, (B, Cin, H, W), dtype=jnp.float32)
    mod_f32 = SpectralConv2dFast(Cin, Cout, 4, 4, k_w, compute_dtype=jnp.float32)
    assert not mod_f32.use_mxu
    out = jax.block_until_ready(jax.jit(mod_f32.__call__)(x))
    ref = jax.block_until_ready(_reference_forward(mod_f32, x))
    assert out.shape == (B, Cout, H, W)
    assert jnp.allclose(out, ref, atol=1e-5, rtol=1e-5)

    # 2) Default bf16 fast path (bf16 HBM traffic, f32 in-register math).
    mod_bf16 = SpectralConv2dFast(Cin, Cout, 4, 4, k_w)
    out_bf = jax.block_until_ready(jax.jit(mod_bf16.__call__)(x))
    ref_bf = jax.block_until_ready(_reference_forward(mod_bf16, x))
    assert out_bf.shape == (B, Cout, H, W)
    assert jnp.allclose(out_bf, ref_bf, atol=3e-2, rtol=3e-2)

    # 3) Multi-tile VPU path (forces >1 mode tile + init-time weight padding).
    H2 = W2 = 32
    x2 = jax.random.normal(k_x2, (B, Cin, H2, W2), dtype=jnp.float32)
    mod_tiled = SpectralConv2dFast(Cin, Cout, 8, 12, k_w2,
                                   compute_dtype=jnp.float32,
                                   mode_tile_override=128)
    assert mod_tiled._num_tiles > 1
    out2 = jax.block_until_ready(jax.jit(mod_tiled.__call__)(x2))
    ref2 = jax.block_until_ready(_reference_forward(mod_tiled, x2))
    assert out2.shape == (B, Cout, H2, W2)
    assert jnp.allclose(out2, ref2, atol=1e-5, rtol=1e-5)

    # 4) Large-channel MXU path (per-mode batched dots, lane-dense packed out).
    CinL = CoutL = 64
    xL = jax.random.normal(k_x, (B, CinL, H, W), dtype=jnp.float32)
    mod_mxu = SpectralConv2dFast(CinL, CoutL, 4, 4, k_w3,
                                 compute_dtype=jnp.float32)
    assert mod_mxu.use_mxu
    outL = jax.block_until_ready(jax.jit(mod_mxu.__call__)(xL))
    refL = jax.block_until_ready(_reference_forward(mod_mxu, xL))
    assert outL.shape == (B, CoutL, H, W)
    errL = jnp.max(jnp.abs(outL - refL)) / (jnp.max(jnp.abs(refL)) + 1e-12)
    assert float(errL) < 1e-2

    print("KERNEL_OK")
</pallas_src>

<mosaic_0001>
module attributes {stable_mosaic.version = 11 : i64} {
  func.func @_spectral_vpu_kernel(%arg0: i32, %arg1: memref<2x4x32xf32, #tpu.memory_space<vmem>>, %arg2: memref<2x4x32xf32, #tpu.memory_space<vmem>>, %arg3: memref<4x4x32xf32, #tpu.memory_space<vmem>>, %arg4: memref<4x4x32xf32, #tpu.memory_space<vmem>>, %arg5: memref<2x4x32xf32, #tpu.memory_space<vmem>>, %arg6: memref<2x4x32xf32, #tpu.memory_space<vmem>>) attributes {dimension_semantics = [#tpu.dimension_semantics<parallel>], iteration_bounds = array<i64: 1>, scalar_prefetch = 0 : i64, scratch_operands = 0 : i64, tpu.core_type = #tpu.core_type<tc>, window_params = [{transform_indices = @transform_0, window_bounds = array<i64: 2, 4, 32>}, {transform_indices = @transform_1, window_bounds = array<i64: 2, 4, 32>}, {transform_indices = @transform_2, window_bounds = array<i64: 4, 4, 32>}, {transform_indices = @transform_3, window_bounds = array<i64: 4, 4, 32>}, {transform_indices = @transform_4, window_bounds = array<i64: 2, 4, 32>}, {transform_indices = @transform_5, window_bounds = array<i64: 2, 4, 32>}]} {
    %c0 = arith.constant 0 : index
    %c0_0 = arith.constant 0 : index
    %c0_1 = arith.constant 0 : index
    %0 = vector.load %arg1[%c0, %c0_0, %c0_1] : memref<2x4x32xf32, #tpu.memory_space<vmem>>, vector<2x4x32xf32>
    %c0_2 = arith.constant 0 : index
    %c0_3 = arith.constant 0 : index
    %c0_4 = arith.constant 0 : index
    %1 = vector.load %arg2[%c0_2, %c0_3, %c0_4] : memref<2x4x32xf32, #tpu.memory_space<vmem>>, vector<2x4x32xf32>
    %cst = arith.constant 0.000000e+00 : f32
    %2 = vector.broadcast %cst : f32 to vector<2x4x32xf32>
    %cst_5 = arith.constant 0.000000e+00 : f32
    %3 = vector.broadcast %cst_5 : f32 to vector<2x4x32xf32>
    %4 = vector.extract_strided_slice %0 {offsets = [0, 0, 0], sizes = [2, 1, 32], strides = [1, 1, 1]} : vector<2x4x32xf32> to vector<2x1x32xf32>
    %5 = vector.extract_strided_slice %1 {offsets = [0, 0, 0], sizes = [2, 1, 32], strides = [1, 1, 1]} : vector<2x4x32xf32> to vector<2x1x32xf32>
    %c0_6 = arith.constant 0 : index
    %c0_7 = arith.constant 0 : index
    %c0_8 = arith.constant 0 : index
    %6 = vector.load %arg3[%c0_6, %c0_7, %c0_8] : memref<4x4x32xf32, #tpu.memory_space<vmem>>, vector<1x4x32xf32>
    %7 = vector.shape_cast %6 : vector<1x4x32xf32> to vector<4x32xf32>
    %8 = vector.shape_cast %7 : vector<4x32xf32> to vector<1x4x32xf32>
    %c0_9 = arith.constant 0 : index
    %c0_10 = arith.constant 0 : index
    %c0_11 = arith.constant 0 : index
    %9 = vector.load %arg4[%c0_9, %c0_10, %c0_11] : memref<4x4x32xf32, #tpu.memory_space<vmem>>, vector<1x4x32xf32>
    %10 = vector.shape_cast %9 : vector<1x4x32xf32> to vector<4x32xf32>
    %11 = vector.shape_cast %10 : vector<4x32xf32> to vector<1x4x32xf32>
    %12 = vector.broadcast %4 : vector<2x1x32xf32> to vector<2x4x32xf32>
    %13 = vector.broadcast %8 : vector<1x4x32xf32> to vector<2x4x32xf32>
    %14 = arith.mulf %12, %13 : vector<2x4x32xf32>
    %15 = arith.addf %2, %14 : vector<2x4x32xf32>
    %16 = vector.broadcast %5 : vector<2x1x32xf32> to vector<2x4x32xf32>
    %17 = vector.broadcast %11 : vector<1x4x32xf32> to vector<2x4x32xf32>
    %18 = arith.mulf %16, %17 : vector<2x4x32xf32>
    %19 = arith.subf %15, %18 : vector<2x4x32xf32>
    %20 = vector.broadcast %4 : vector<2x1x32xf32> to vector<2x4x32xf32>
    %21 = vector.broadcast %11 : vector<1x4x32xf32> to vector<2x4x32xf32>
    %22 = arith.mulf %20, %21 : vector<2x4x32xf32>
    %23 = arith.addf %3, %22 : vector<2x4x32xf32>
    %24 = vector.broadcast %5 : vector<2x1x32xf32> to vector<2x4x32xf32>
    %25 = vector.broadcast %8 : vector<1x4x32xf32> to vector<2x4x32xf32>
    %26 = arith.mulf %24, %25 : vector<2x4x32xf32>
    %27 = arith.addf %23, %26 : vector<2x4x32xf32>
    %28 = vector.extract_strided_slice %0 {offsets = [0, 1, 0], sizes = [2, 1, 32], strides = [1, 1, 1]} : vector<2x4x32xf32> to vector<2x1x32xf32>
    %29 = vector.extract_strided_slice %1 {offsets = [0, 1, 0], sizes = [2, 1, 32], strides = [1, 1, 1]} : vector<2x4x32xf32> to vector<2x1x32xf32>
    %c1 = arith.constant 1 : index
    %c0_12 = arith.constant 0 : index
    %c0_13 = arith.constant 0 : index
    %30 = vector.load %arg3[%c1, %c0_12, %c0_13] : memref<4x4x32xf32, #tpu.memory_space<vmem>>, vector<1x4x32xf32>
    %31 = vector.shape_cast %30 : vector<1x4x32xf32> to vector<4x32xf32>
    %32 = vector.shape_cast %31 : vector<4x32xf32> to vector<1x4x32xf32>
    %c1_14 = arith.constant 1 : index
    %c0_15 = arith.constant 0 : index
    %c0_16 = arith.constant 0 : index
    %33 = vector.load %arg4[%c1_14, %c0_15, %c0_16] : memref<4x4x32xf32, #tpu.memory_space<vmem>>, vector<1x4x32xf32>
    %34 = vector.shape_cast %33 : vector<1x4x32xf32> to vector<4x32xf32>
    %35 = vector.shape_cast %34 : vector<4x32xf32> to vector<1x4x32xf32>
    %36 = vector.broadcast %28 : vector<2x1x32xf32> to vector<2x4x32xf32>
    %37 = vector.broadcast %32 : vector<1x4x32xf32> to vector<2x4x32xf32>
    %38 = arith.mulf %36, %37 : vector<2x4x32xf32>
    %39 = arith.addf %19, %38 : vector<2x4x32xf32>
    %40 = vector.broadcast %29 : vector<2x1x32xf32> to vector<2x4x32xf32>
    %41 = vector.broadcast %35 : vector<1x4x32xf32> to vector<2x4x32xf32>
    %42 = arith.mulf %40, %41 : vector<2x4x32xf32>
    %43 = arith.subf %39, %42 : vector<2x4x32xf32>
    %44 = vector.broadcast %28 : vector<2x1x32xf32> to vector<2x4x32xf32>
    %45 = vector.broadcast %35 : vector<1x4x32xf32> to vector<2x4x32xf32>
    %46 = arith.mulf %44, %45 : vector<2x4x32xf32>
    %47 = arith.addf %27, %46 : vector<2x4x32xf32>
    %48 = vector.broadcast %29 : vector<2x1x32xf32> to vector<2x4x32xf32>
    %49 = vector.broadcast %32 : vector<1x4x32xf32> to vector<2x4x32xf32>
    %50 = arith.mulf %48, %49 : vector<2x4x32xf32>
    %51 = arith.addf %47, %50 : vector<2x4x32xf32>
    %52 = vector.extract_strided_slice %0 {offsets = [0, 2, 0], sizes = [2, 1, 32], strides = [1, 1, 1]} : vector<2x4x32xf32> to vector<2x1x32xf32>
    %53 = vector.extract_strided_slice %1 {offsets = [0, 2, 0], sizes = [2, 1, 32], strides = [1, 1, 1]} : vector<2x4x32xf32> to vector<2x1x32xf32>
    %c2 = arith.constant 2 : index
    %c0_17 = arith.constant 0 : index
    %c0_18 = arith.constant 0 : index
    %54 = vector.load %arg3[%c2, %c0_17, %c0_18] : memref<4x4x32xf32, #tpu.memory_space<vmem>>, vector<1x4x32xf32>
    %55 = vector.shape_cast %54 : vector<1x4x32xf32> to vector<4x32xf32>
    %56 = vector.shape_cast %55 : vector<4x32xf32> to vector<1x4x32xf32>
    %c2_19 = arith.constant 2 : index
    %c0_20 = arith.constant 0 : index
    %c0_21 = arith.constant 0 : index
    %57 = vector.load %arg4[%c2_19, %c0_20, %c0_21] : memref<4x4x32xf32, #tpu.memory_space<vmem>>, vector<1x4x32xf32>
    %58 = vector.shape_cast %57 : vector<1x4x32xf32> to vector<4x32xf32>
    %59 = vector.shape_cast %58 : vector<4x32xf32> to vector<1x4x32xf32>
    %60 = vector.broadcast %52 : vector<2x1x32xf32> to vector<2x4x32xf32>
    %61 = vector.broadcast %56 : vector<1x4x32xf32> to vector<2x4x32xf32>
    %62 = arith.mulf %60, %61 : vector<2x4x32xf32>
    %63 = arith.addf %43, %62 : vector<2x4x32xf32>
    %64 = vector.broadcast %53 : vector<2x1x32xf32> to vector<2x4x32xf32>
    %65 = vector.broadcast %59 : vector<1x4x32xf32> to vector<2x4x32xf32>
    %66 = arith.mulf %64, %65 : vector<2x4x32xf32>
    %67 = arith.subf %63, %66 : vector<2x4x32xf32>
    %68 = vector.broadcast %52 : vector<2x1x32xf32> to vector<2x4x32xf32>
    %69 = vector.broadcast %59 : vector<1x4x32xf32> to vector<2x4x32xf32>
    %70 = arith.mulf %68, %69 : vector<2x4x32xf32>
    %71 = arith.addf %51, %70 : vector<2x4x32xf32>
    %72 = vector.broadcast %53 : vector<2x1x32xf32> to vector<2x4x32xf32>
    %73 = vector.broadcast %56 : vector<1x4x32xf32> to vector<2x4x32xf32>
    %74 = arith.mulf %72, %73 : vector<2x4x32xf32>
    %75 = arith.addf %71, %74 : vector<2x4x32xf32>
    %76 = vector.extract_strided_slice %0 {offsets = [0, 3, 0], sizes = [2, 1, 32], strides = [1, 1, 1]} : vector<2x4x32xf32> to vector<2x1x32xf32>
    %77 = vector.extract_strided_slice %1 {offsets = [0, 3, 0], sizes = [2, 1, 32], strides = [1, 1, 1]} : vector<2x4x32xf32> to vector<2x1x32xf32>
    %c3 = arith.constant 3 : index
    %c0_22 = arith.constant 0 : index
    %c0_23 = arith.constant 0 : index
    %78 = vector.load %arg3[%c3, %c0_22, %c0_23] : memref<4x4x32xf32, #tpu.memory_space<vmem>>, vector<1x4x32xf32>
    %79 = vector.shape_cast %78 : vector<1x4x32xf32> to vector<4x32xf32>
    %80 = vector.shape_cast %79 : vector<4x32xf32> to vector<1x4x32xf32>
    %c3_24 = arith.constant 3 : index
    %c0_25 = arith.constant 0 : index
    %c0_26 = arith.constant 0 : index
    %81 = vector.load %arg4[%c3_24, %c0_25, %c0_26] : memref<4x4x32xf32, #tpu.memory_space<vmem>>, vector<1x4x32xf32>
    %82 = vector.shape_cast %81 : vector<1x4x32xf32> to vector<4x32xf32>
    %83 = vector.shape_cast %82 : vector<4x32xf32> to vector<1x4x32xf32>
    %84 = vector.broadcast %76 : vector<2x1x32xf32> to vector<2x4x32xf32>
    %85 = vector.broadcast %80 : vector<1x4x32xf32> to vector<2x4x32xf32>
    %86 = arith.mulf %84, %85 : vector<2x4x32xf32>
    %87 = arith.addf %67, %86 : vector<2x4x32xf32>
    %88 = vector.broadcast %77 : vector<2x1x32xf32> to vector<2x4x32xf32>
    %89 = vector.broadcast %83 : vector<1x4x32xf32> to vector<2x4x32xf32>
    %90 = arith.mulf %88, %89 : vector<2x4x32xf32>
    %91 = arith.subf %87, %90 : vector<2x4x32xf32>
    %92 = vector.broadcast %76 : vector<2x1x32xf32> to vector<2x4x32xf32>
    %93 = vector.broadcast %83 : vector<1x4x32xf32> to vector<2x4x32xf32>
    %94 = arith.mulf %92, %93 : vector<2x4x32xf32>
    %95 = arith.addf %75, %94 : vector<2x4x32xf32>
    %96 = vector.broadcast %77 : vector<2x1x32xf32> to vector<2x4x32xf32>
    %97 = vector.broadcast %80 : vector<1x4x32xf32> to vector<2x4x32xf32>
    %98 = arith.mulf %96, %97 : vector<2x4x32xf32>
    %99 = arith.addf %95, %98 : vector<2x4x32xf32>
    %c0_27 = arith.constant 0 : index
    %c0_28 = arith.constant 0 : index
    %c0_29 = arith.constant 0 : index
    %100 = vector.load %arg5[%c0_27, %c0_28, %c0_29] : memref<2x4x32xf32, #tpu.memory_space<vmem>>, vector<2x4x32xf32>
    tpu.vector_store %arg5[%c0_27, %c0_28, %c0_29], %91 {strides = array<i32>} : memref<2x4x32xf32, #tpu.memory_space<vmem>>, vector<2x4x32xf32>,
    %c0_30 = arith.constant 0 : index
    %c0_31 = arith.constant 0 : index
    %c0_32 = arith.constant 0 : index
    %101 = vector.load %arg6[%c0_30, %c0_31, %c0_32] : memref<2x4x32xf32, #tpu.memory_space<vmem>>, vector<2x4x32xf32>
    tpu.vector_store %arg6[%c0_30, %c0_31, %c0_32], %99 {strides = array<i32>} : memref<2x4x32xf32, #tpu.memory_space<vmem>>, vector<2x4x32xf32>,
    return
  }
  func.func @transform_0(%arg0: i32) -> (i32, i32, i32) {
    %c0_i32 = arith.constant 0 : i32
    %c0_i32_0 = arith.constant 0 : i32
    %c0_i32_1 = arith.constant 0 : i32
    return %c0_i32, %c0_i32_0, %arg0 : i32, i32, i32
  }
  func.func @transform_1(%arg0: i32) -> (i32, i32, i32) {
    %c0_i32 = arith.constant 0 : i32
    %c0_i32_0 = arith.constant 0 : i32
    %c0_i32_1 = arith.constant 0 : i32
    return %c0_i32, %c0_i32_0, %arg0 : i32, i32, i32
  }
  func.func @transform_2(%arg0: i32) -> (i32, i32, i32) {
    %c0_i32 = arith.constant 0 : i32
    %c0_i32_0 = arith.constant 0 : i32
    %c0_i32_1 = arith.constant 0 : i32
    return %c0_i32, %c0_i32_0, %arg0 : i32, i32, i32
  }
  func.func @transform_3(%arg0: i32) -> (i32, i32, i32) {
    %c0_i32 = arith.constant 0 : i32
    %c0_i32_0 = arith.constant 0 : i32
    %c0_i32_1 = arith.constant 0 : i32
    return %c0_i32, %c0_i32_0, %arg0 : i32, i32, i32
  }
  func.func @transform_4(%arg0: i32) -> (i32, i32, i32) {
    %c0_i32 = arith.constant 0 : i32
    %c0_i32_0 = arith.constant 0 : i32
    %c0_i32_1 = arith.constant 0 : i32
    return %c0_i32, %c0_i32_0, %arg0 : i32, i32, i32
  }
  func.func @transform_5(%arg0: i32) -> (i32, i32, i32) {
    %c0_i32 = arith.constant 0 : i32
    %c0_i32_0 = arith.constant 0 : i32
    %c0_i32_1 = arith.constant 0 : i32
    return %c0_i32, %c0_i32_0, %arg0 : i32, i32, i32
  }
}

</mosaic_0001>

<bundles_post_ra>
// kernel: a_call__.1
= control target key start
LH: loop header
LB: loop body
LE: loop exit
PB: predicated region body
PF: predicated region fallthrough
CT: control target
= control target key end

     0   :  { %vm117_vm0 = vcmask 257024   ;;  %s248_s0 = inlined_call_operand.vmem [shape: f32[2,4,32], index: 0, kind: input, shape index: {}]   ;;  %s249_s1 = inlined_call_operand.vmem [shape: f32[2,4,32], index: 1, kind: input, shape index: {}]   ;;  %s250_s2 = inlined_call_operand.vmem [shape: f32[4,4,32], index: 2, kind: input, shape index: {}]   ;;  %s251_s3 = inlined_call_operand.vmem [shape: f32[4,4,32], index: 3, kind: input, shape index: {}]   ;;  %s252_s4 = inlined_call_operand.vmem [shape: f32[2,4,32], index: 4, kind: output, shape index: {0}]   ;;  %s253_s5 = inlined_call_operand.vmem [shape: f32[2,4,32], index: 5, kind: output, shape index: {1}]  }
   0x1   :  { %v169_v0 = vld [vmem:[%s248_s0] sm:$0xf]  ;;  %v130_v6 = vld [vmem:[%s250_s2 + $0x4] sm:$0xf]  ;;  %v196_v14 = vld [vmem:[%s250_s2 + $0x8] sm:$0xf] }
   0x2   :  { %v174_v1 = vld [vmem:[%s249_s1] sm:$0xf]  ;;  %v25_v4 = vperm.slane %v169_v0, 0  ;;  %v49_v7 = vperm.slane %v169_v0, 1  ;;  %v73_v11 = vperm.slane %v169_v0, 2  ;;  %v97_v21 = vperm.slane %v169_v0, 3 }
   0x3   :  { %v23_v2 = vld [vmem:[%s250_s2] sm:$0xf]  ;;  %v31_v5 = vperm.slane %v174_v1, 0  ;;  %v55_v8 = vperm.slane %v174_v1, 1  ;;  %v131_v12 = vld [vmem:[%s251_s3 + $0x4] sm:$0xf] }
   0x4   :  { %v24_v3 = vld [vmem:[%s251_s3] sm:$0xf]  ;;  %v27_v9 = vmul.f32 %v25_v4, %v23_v2  ;;  %v51_v13 = vmul.f32 %v130_v6, %v49_v7  ;;  %v201_v15 = vld [vmem:[%s248_s0 + $0x4] sm:$0xf]  ;;  %v79_v18 = vperm.slane %v174_v1, 2  ;;  %v103_v22 = vperm.slane %v174_v1, 3 }
   0x5   :  { %v33_v10 = vmul.f32 %v31_v5, %v24_v3  ;;  %v57_v17 = vmul.f32 %v131_v12, %v55_v8  ;;  %v207_v19 = vld [vmem:[%s249_s1 + $0x4] sm:$0xf]  ;;  %v26_v20 = vperm.slane %v201_v15, 0  ;;  %v50_v24 = vperm.slane %v201_v15, 1  ;;  %v134_v27 = vld [vmem:[%s250_s2 + $0xc] sm:$0xf] }
   0x6   :  { %v32_v23 = vperm.slane %v207_v19, 0  ;;  %v75_v26 = vmul.f32 %v196_v14, %v73_v11  ;;  %v56_v29 = vperm.slane %v207_v19, 1  ;;  %v133_v30 = vld [vmem:[%s251_s3 + $0x8] sm:$0xf]  ;;  %v74_v33 = vperm.slane %v201_v15, 2 }
   0x7   :  { %v35_v16 = vsub.f32 %v27_v9, %v33_v10  ;;  %v28_v28 = vmul.f32 %v26_v20, %v23_v2  ;;  %v52_v32 = vmul.f32 %v130_v6, %v50_v24  ;;  %v81_v35 = vmul.f32 %v133_v30, %v79_v18  ;;  %v135_v37 = vld [vmem:[%s251_s3 + $0xc] sm:$0xf] }
   0x8   :  { %v34_v31 = vmul.f32 %v32_v23, %v24_v3  ;;  %v80_v36 = vperm.slane %v207_v19, 2  ;;  %v99_v38 = vmul.f32 %v134_v27, %v97_v21  ;;  %v58_v40 = vmul.f32 %v131_v12, %v56_v29 }
   0x9   :  { %v53_v25 = vadd.f32 %v51_v13, %v35_v16  ;;  %v37_v41 = vmul.f32 %v25_v4, %v24_v3  ;;  %v105_v43 = vmul.f32 %v135_v37, %v103_v22  ;;  %v41_v44 = vmul.f32 %v31_v5, %v23_v2 }
   0xa   :  { %v36_v39 = vsub.f32 %v28_v28, %v34_v31  ;;  %v61_v45 = vmul.f32 %v131_v12, %v49_v7  ;;  %v76_v47 = vmul.f32 %v196_v14, %v74_v33  ;;  %v98_v48 = vperm.slane %v201_v15, 3 }
   0xb   :  { %v59_v34 = vsub.f32 %v53_v25, %v57_v17  ;;  %v104_v49 = vperm.slane %v207_v19, 3  ;;  %v82_v51 = vmul.f32 %v133_v30, %v80_v36  ;;  %v43_v52 = vadd.f32 %v41_v44, %v37_v41 }
   0xc   :  { %v54_v46 = vadd.f32 %v52_v32, %v36_v39  ;;  %v65_v53 = vmul.f32 %v130_v6, %v55_v8  ;;  %v38_v55 = vmul.f32 %v26_v20, %v24_v3  ;;  %v42_v56 = vmul.f32 %v32_v23, %v23_v2 }
   0xd   :  { %v77_v42 = vadd.f32 %v75_v26, %v59_v34  ;;  %v62_v57 = vmul.f32 %v131_v12, %v50_v24  ;;  %v63_v59 = vadd.f32 %v61_v45, %v43_v52  ;;  %v85_v60 = vmul.f32 %v133_v30, %v73_v11 }
   0xe   :  { %v60_v54 = vsub.f32 %v54_v46, %v58_v40  ;;  %v100_v62 = vmul.f32 %v134_v27, %v98_v48  ;;  %v44_v63 = vadd.f32 %v42_v56, %v38_v55  ;;  %v66_v0 = vmul.f32 %v130_v6, %v56_v29 }
   0xf   :  { %v83_v50 = vsub.f32 %v77_v42, %v81_v35  ;;  %v67_v4 = vadd.f32 %v65_v53, %v63_v59  ;;  %v89_v5 = vmul.f32 %v196_v14, %v79_v18  ;;  %v106_v9 = vmul.f32 %v135_v37, %v104_v49 }
  0x10   :  { %v78_v61 = vadd.f32 %v76_v47, %v60_v54  ;;  %v64_v10 = vadd.f32 %v62_v57, %v44_v63  ;;  %v86_v8 = vmul.f32 %v133_v30, %v74_v33  ;;  %v109_v3 = vmul.f32 %v135_v37, %v97_v21 }
  0x11   :  { %v101_v58 = vadd.f32 %v99_v38, %v83_v50  ;;  %v87_v2 = vadd.f32 %v85_v60, %v67_v4  ;;  %v90_v13 = vmul.f32 %v196_v14, %v80_v36  ;;  %v113_v15 = vmul.f32 %v134_v27, %v103_v22 }
  0x12   :  { %v84_v7 = vsub.f32 %v78_v61, %v82_v51  ;;  %v68_v12 = vadd.f32 %v66_v0, %v64_v10  ;;  %v110_v18 = vmul.f32 %v135_v37, %v98_v48  ;;  %v114_v23 = vmul.f32 %v134_v27, %v104_v49 }
  0x13   :  { %v107_v1 = vsub.f32 %v101_v58, %v105_v43  ;;  %v91_v6 = vadd.f32 %v89_v5, %v87_v2 }
  0x14   :  { %v102_v11 = vadd.f32 %v100_v62, %v84_v7  ;;  %v88_v17 = vadd.f32 %v86_v8, %v68_v12 }
  0x15   :  { %118 = vst.msk [vmem:[%s252_s4] sm:$0xf] %vm117_vm0, %v107_v1  ;;  %v111_v19 = vadd.f32 %v109_v3, %v91_v6 }
  0x16   :  { %v108_v16 = vsub.f32 %v102_v11, %v106_v9  ;;  %v92_v20 = vadd.f32 %v90_v13, %v88_v17 }
  0x17   :  { %v115_v24 = vadd.f32 %v113_v15, %v111_v19 }
  0x18   :  { %119 = vst.msk [vmem:[%s252_s4 + $0x4] sm:$0xf] %vm117_vm0, %v108_v16  ;;  %v112_v25 = vadd.f32 %v110_v18, %v92_v20 }
  0x19   :  { %120 = vst.msk [vmem:[%s253_s5] sm:$0xf] %vm117_vm0, %v115_v24 }
  0x1a   :  { %v116_v14 = vadd.f32 %v114_v23, %v112_v25 }
  0x1c   :  { %121 = vst.msk [vmem:[%s253_s5 + $0x4] sm:$0xf] %vm117_vm0, %v116_v14 }

// kernel: reverse.1
= control target key start
LH: loop header
LB: loop body
LE: loop exit
PB: predicated region body
PF: predicated region fallthrough
CT: control target
= control target key end

     0   :  { %v72_v3 = vlaneseq  ;;  %v65_v6 = vld [vmem:[#allocation0 + $0x7] ss:$-1 sm:$0xff]  ;;  %v79_v8 = vld [vmem:[#allocation0 + $0x17] ss:$-1 sm:$0xff]  ;;  %s331_s0 = inlined_call_operand.vmem [shape: f32[2,4,16,7], index: 0, kind: input, shape index: {}]   ;;  %s332_s1 = inlined_call_operand.vmem [shape: f32[2,4,16,7], index: 1, kind: output, shape index: {}]  }
   0x1   :  { %v45_v0 = vld [vmem:[%s331_s0] sm:$0xff]  ;;  %v47_v1 = vld [vmem:[%s331_s0 + $0x8] sm:$0xff]  ;;  %v49_v2 = vld [vmem:[%s331_s0 + $0x10] sm:$0xff]  ;;  %v66_v12 = vrot.slane %v65_v6, 1  ;;  %v80_v13 = vrot.slane %v79_v8, 1 }
   0x2   :  { %46 = vst [vmem:[#allocation0 + $0x8] sm:$0xff] %v45_v0  ;;  %v51_v4 = vld [vmem:[%s331_s0 + $0x18] sm:$0xff]  ;;  %v53_v5 = vld [vmem:[%s331_s0 + $0x20] sm:$0xff]  ;;  %v55_v7 = vld [vmem:[%s331_s0 + $0x28] sm:$0xff]  ;;  %v73_v10 = vshrl.u32 %v72_v3, 7 }
   0x3   :  { %48 = vst [vmem:[#allocation0 + $0x18] sm:$0xff] %v47_v1  ;;  %v57_v9 = vld [vmem:[%s331_s0 + $0x30] sm:$0xff]  ;;  %v59_v11 = vld [vmem:[%s331_s0 + $0x38] sm:$0xff]  ;;  %v93_v14 = vld [vmem:[#allocation0 + $0x27] ss:$-1 sm:$0xff] }
   0x4   :  { %50 = vst [vmem:[#allocation0 + $0x28] sm:$0xff] %v49_v2  ;;  %vm74_vm0 = vcmp.lt.s32.totalorder %v73_v10, 7  ;;  %v107_v16 = vld [vmem:[#allocation0 + $0x37] ss:$-1 sm:$0xff]  ;;  %v94_v19 = vrot.slane %v93_v14, 1 }
   0x5   :  { %52 = vst [vmem:[#allocation0 + $0x38] sm:$0xff] %v51_v4  ;;  %v121_v22 = vld [vmem:[#allocation0 + $0x47] ss:$-1 sm:$0xff]  ;;  %v108_v24 = vrot.slane %v107_v16, 1  ;;  %v135_v28 = vld [vmem:[#allocation0 + $0x57] ss:$-1 sm:$0xff] }
   0x6   :  { %54 = vst [vmem:[#allocation0 + $0x48] sm:$0xff] %v53_v5  ;;  %v122_v29 = vrot.slane %v121_v22, 1  ;;  %v149_v32 = vld [vmem:[#allocation0 + $0x67] ss:$-1 sm:$0xff]  ;;  %v136_v33 = vrot.slane %v135_v28, 1 }
   0x7   :  { %56 = vst [vmem:[#allocation0 + $0x58] sm:$0xff] %v55_v7  ;;  %v163_v36 = vld [vmem:[#allocation0 + $0x77] ss:$-1 sm:$0xff]  ;;  %v150_v37 = vrot.slane %v149_v32, 1 }
   0x8   :  { %58 = vst [vmem:[#allocation0 + $0x68] sm:$0xff] %v57_v9  ;;  %v164_v40 = vrot.slane %v163_v36, 1 }
   0x9   :  { %60 = vst [vmem:[#allocation0 + $0x78] sm:$0xff] %v59_v11  ;;  %v70_v15 = vld [vmem:[#allocation0 + $0xf] ss:$-1 sm:$0xff] }
   0xa   :  { %67 = vst [vmem:[#allocation1] sm:$0xff] %v66_v12  ;;  %v71_v17 = vrot.slane %v70_v15, 1  ;;  %v84_v18 = vld [vmem:[#allocation0 + $0x1f] ss:$-1 sm:$0xff] }
   0xb   :  { %81 = vst [vmem:[#allocation1 + $0x8] sm:$0xff] %v80_v13  ;;  %v85_v20 = vrot.slane %v84_v18, 1  ;;  %v98_v21 = vld [vmem:[#allocation0 + $0x2f] ss:$-1 sm:$0xff] }
   0xc   :  { %75 = vst.msk [vmem:[#allocation1] sm:$0xff] %vm74_vm0, %v71_v17  ;;  %v99_v23 = vrot.slane %v98_v21, 1  ;;  %v112_v25 = vld [vmem:[#allocation0 + $0x3f] ss:$-1 sm:$0xff] }
   0xd   :  { %89 = vst.msk [vmem:[#allocation1 + $0x8] sm:$0xff] %vm74_vm0, %v85_v20  ;;  %v113_v26 = vrot.slane %v112_v25, 1  ;;  %v126_v27 = vld [vmem:[#allocation0 + $0x4f] ss:$-1 sm:$0xff] }
   0xe   :  { %95 = vst [vmem:[#allocation1 + $0x10] sm:$0xff] %v94_v19  ;;  %v140_v30 = vld [vmem:[#allocation0 + $0x5f] ss:$-1 sm:$0xff]  ;;  %v127_v31 = vrot.slane %v126_v27, 1 }
   0xf   :  { %103 = vst.msk [vmem:[#allocation1 + $0x10] sm:$0xff] %vm74_vm0, %v99_v23  ;;  %v154_v34 = vld [vmem:[#allocation0 + $0x6f] ss:$-1 sm:$0xff]  ;;  %v141_v35 = vrot.slane %v140_v30, 1 }
  0x10   :  { %109 = vst [vmem:[#allocation1 + $0x18] sm:$0xff] %v108_v24  ;;  %v168_v38 = vld [vmem:[#allocation0 + $0x7f] ss:$-1 sm:$0xff]  ;;  %v155_v39 = vrot.slane %v154_v34, 1 }
  0x11   :  { %117 = vst.msk [vmem:[#allocation1 + $0x18] sm:$0xff] %vm74_vm0, %v113_v26  ;;  %v169_v41 = vrot.slane %v168_v38, 1 }
  0x12   :  { %123 = vst [vmem:[#allocation1 + $0x20] sm:$0xff] %v122_v29 }
  0x13   :  { %131 = vst.msk [vmem:[#allocation1 + $0x20] sm:$0xff] %vm74_vm0, %v127_v31  ;;  %v216_v42 = vld [vmem:[#allocation1] sm:$0xff] }
  0x14   :  { %137 = vst [vmem:[#allocation1 + $0x28] sm:$0xff] %v136_v33  ;;  %v218_v43 = vld [vmem:[#allocation1 + $0x8] sm:$0xff] }
  0x15   :  { %145 = vst.msk [vmem:[#allocation1 + $0x28] sm:$0xff] %vm74_vm0, %v141_v35 }
  0x16   :  { %151 = vst [vmem:[#allocation1 + $0x30] sm:$0xff] %v150_v37  ;;  %v220_v44 = vld [vmem:[#allocation1 + $0x10] sm:$0xff] }
  0x17   :  { %159 = vst.msk [vmem:[#allocation1 + $0x30] sm:$0xff] %vm74_vm0, %v155_v39 }
  0x18   :  { %165 = vst [vmem:[#allocation1 + $0x38] sm:$0xff] %v164_v40  ;;  %v222_v45 = vld [vmem:[#allocation1 + $0x18] sm:$0xff] }
  0x19   :  { %173 = vst.msk [vmem:[#allocation1 + $0x38] sm:$0xff] %vm74_vm0, %v169_v41 }
  0x1a   :  { %217 = vst [vmem:[%s332_s1] sm:$0xff] %v216_v42  ;;  %v224_v46 = vld [vmem:[#allocation1 + $0x20] sm:$0xff] }
  0x1b   :  { %219 = vst [vmem:[%s332_s1 + $0x8] sm:$0xff] %v218_v43 }
  0x1c   :  { %221 = vst [vmem:[%s332_s1 + $0x10] sm:$0xff] %v220_v44  ;;  %v226_v47 = vld [vmem:[#allocation1 + $0x28] sm:$0xff] }
  0x1d   :  { %223 = vst [vmem:[%s332_s1 + $0x18] sm:$0xff] %v222_v45 }
  0x1e   :  { %225 = vst [vmem:[%s332_s1 + $0x20] sm:$0xff] %v224_v46  ;;  %v228_v48 = vld [vmem:[#allocation1 + $0x30] sm:$0xff] }
  0x1f   :  { %227 = vst [vmem:[%s332_s1 + $0x28] sm:$0xff] %v226_v47 }
  0x20   :  { %229 = vst [vmem:[%s332_s1 + $0x30] sm:$0xff] %v228_v48  ;;  %v230_v49 = vld [vmem:[#allocation1 + $0x38] sm:$0xff] }
  0x21   :  { %231 = vst [vmem:[%s332_s1 + $0x38] sm:$0xff] %v230_v49 }

</bundles_post_ra>
